<compile_context>
chip_gen: v7x
topology: tpu7x:2x2x1
jax: 0.10.0
libtpu: 0.0.40
codegen_flags: <defaults>
</compile_context>

<pallas_src>
import jax
import jax.numpy as jnp
from jax.experimental import pallas as pl
from jax.experimental.pallas import tpu as pltpu

_LANE = 128
_MAX_TILE = 32768          # lanes per grid step; ~8 MiB double-buffered VMEM
_PALLAS_MIN_BATCH = 16384  # below this, plain XLA fusion wins


def _sig_list_kernel(w_ref, b_ref, buff_ref, x_ref, l0_ref, l1_ref, o_ref):
    """Transposed, lane-dense layout (batch on the 128-lane axis).

    SMEM:  w_ref (n_targets, n_dims), b_ref (n_targets,), buff_ref (n_targets,)
    VMEM:  x_ref (n_dims, TB), l0_ref (1, TB), l1_ref (2, TB), o_ref (n_targets, TB)
    """
    n_dims = x_ref.shape[0]
    n_targets = o_ref.shape[0]

    # lx[1].sum(axis=1, keepdim=True) in transposed layout == 2-term VPU add.
    s = l1_ref[0:1, :] + l1_ref[1:2, :]          # (1, TB)
    extra = l0_ref[0:1, :] * s                   # (1, TB)

    for t in range(n_targets):                   # static, tiny (n_targets == 1)
        # Linear layer as VPU multiply-adds with SMEM scalar weights (no MXU).
        acc = x_ref[0:1, :] * w_ref[t, 0]
        for d in range(1, n_dims):
            acc = acc + x_ref[d:d + 1, :] * w_ref[t, d]
        z = acc + b_ref[t]
        # EUP sigmoid, then lane-dense f32 store (masked only on ragged block).
        o_ref[t:t + 1, :] = jax.nn.sigmoid(z) - buff_ref[t] + extra


def _select_tile(b: int) -> int:
    """Lane-tile size: multiple of 128, capped at _MAX_TILE, and split so the
    grid has >= 2 blocks whenever possible (keeps both v7x TCs busy)."""
    b128 = pl.cdiv(b, _LANE) * _LANE
    tb = min(_MAX_TILE, b128)
    if tb == b128 and b128 > _LANE:
        tb = pl.cdiv(b128 // 2, _LANE) * _LANE
    return tb


def signature_list_fixed_length(x, lx, weight, bias, buff, *, force_pallas=False):
    """x: (B, n_dims) f32; lx = [(B, 1), (B, 2)] f32.

    weight: (n_targets, n_dims) (PyTorch nn.Linear layout),
    bias: (n_targets,), buff: (n_targets,).
    Returns (B, n_targets) f32.
    """
    B, n_dims = x.shape
    n_targets = weight.shape[0]
    l0, l1 = lx

    w32 = weight.astype(jnp.float32)
    b32 = bias.astype(jnp.float32)
    buf32 = buff.astype(jnp.float32)
    x32 = x.astype(jnp.float32)
    l0_32 = l0.astype(jnp.float32)
    l1_32 = l1.astype(jnp.float32)

    # Small-batch fallback: one XLA elementwise fusion beats any custom call.
    if not force_pallas and B < _PALLAS_MIN_BATCH:
        return (jax.nn.sigmoid(x32 @ w32.T + b32) - buf32
                + l0_32 * jnp.sum(l1_32, axis=1, keepdims=True))

    # Lane-dense layout: batch -> last (lane) axis.  x.T / l1.T are the only
    # real transposes; allow_input_fusion lets XLA fold them (and the casts)
    # into the pallas_call operands instead of materialising them in HBM.
    xt = x32.T            # (n_dims, B)
    l0t = l0_32.T         # (1, B)   -- free reshape
    l1t = l1_32.T         # (2, B)

    tb = _select_tile(B)
    grid = (pl.cdiv(B, tb),)

    smem = pl.BlockSpec(memory_space=pltpu.MemorySpace.SMEM)

    # Advisory hint to XLA: tiny, memory-bound per element.
    cost = pl.CostEstimate(
        flops=B * n_targets * (2 * n_dims + 4),
        transcendentals=B * n_targets,
        bytes_accessed=4 * B * (n_dims + 3 + n_targets),
    )

    out_t = pl.pallas_call(
        _sig_list_kernel,
        out_shape=jax.ShapeDtypeStruct((n_targets, B), jnp.float32),
        grid=grid,
        in_specs=[
            smem,                                            # weight (n_targets, n_dims)
            smem,                                            # bias   (n_targets,)
            smem,                                            # buff   (n_targets,)
            pl.BlockSpec((n_dims, tb), lambda i: (0, i)),    # x^T    (n_dims, TB)
            pl.BlockSpec((1, tb), lambda i: (0, i)),         # lx0^T  (1, TB)
            pl.BlockSpec((2, tb), lambda i: (0, i)),         # lx1^T  (2, TB)
        ],
        out_specs=pl.BlockSpec((n_targets, tb), lambda i: (0, i)),
        compiler_params=pltpu.CompilerParams(
            dimension_semantics=("parallel",),
            # Only the tensor operands (indices 3,4,5) may fuse their
            # transpose/cast producers into the custom call.
            allow_input_fusion=[False, False, False, True, True, True],
        ),
        cost_estimate=cost,
    )(w32, b32, buf32, xt, l0t, l1t)

    # (1, B) -> (B, 1) is a free reshape.
    return out_t.T


def _reference(x, lx, weight, bias, buff):
    return (jax.nn.sigmoid(x @ weight.T + bias) - buff
            + lx[0] * jnp.sum(lx[1], axis=1, keepdims=True))


if __name__ == "__main__":
    n_dims, n_targets = 3, 1

    key = jax.random.PRNGKey(0)
    kw, kb = jax.random.split(key, 2)

    # Deterministic parameter init (mimics nn.Linear uniform(-1/sqrt(fan_in), ...)).
    bound = 1.0 / jnp.sqrt(jnp.float32(n_dims))
    weight = jax.random.uniform(kw, (n_targets, n_dims), jnp.float32, -bound, bound)
    bias = jax.random.uniform(kb, (n_targets,), jnp.float32, -bound, bound)
    buff = jnp.full((n_targets,), 0.5, dtype=jnp.float32)

    ok = True
    # Exercise the Pallas path (forced, since small batches fall back to XLA):
    #   B=8   -> module's example shape, single (ragged) block
    #   B=300 -> two-block grid with a masked ragged last block
    for B in (8, 300):
        x = (jnp.arange(B * n_dims, dtype=jnp.float32) + 10.0).reshape(B, n_dims)
        lx0 = (jnp.arange(B, dtype=jnp.float32) + 10.0).reshape(B, 1)
        lx1 = (jnp.arange(B * 2, dtype=jnp.float32) + 10.0).reshape(B, 2)

        out = signature_list_fixed_length(x, [lx0, lx1], weight, bias, buff,
                                          force_pallas=True)
        out = jax.block_until_ready(out)

        ref = _reference(x, [lx0, lx1], weight, bias, buff)
        ok &= out.shape == (B, n_targets)
        ok &= bool(jnp.allclose(out, ref, atol=1e-5, rtol=1e-5))

    # Also sanity-check the small-batch XLA fallback path.
    B = 8
    x = (jnp.arange(B * n_dims, dtype=jnp.float32) + 10.0).reshape(B, n_dims)
    lx0 = (jnp.arange(B, dtype=jnp.float32) + 10.0).reshape(B, 1)
    lx1 = (jnp.arange(B * 2, dtype=jnp.float32) + 10.0).reshape(B, 2)
    out_fb = jax.block_until_ready(
        signature_list_fixed_length(x, [lx0, lx1], weight, bias, buff))
    ok &= bool(jnp.allclose(out_fb, _reference(x, [lx0, lx1], weight, bias, buff),
                            atol=1e-5, rtol=1e-5))

    assert ok
    print("KERNEL_OK")
</pallas_src>

<mosaic_0001>
module attributes {stable_mosaic.version = 11 : i64} {
  func.func @_sig_list_kernel(%arg0: i32, %arg1: memref<1x3xf32, #tpu.memory_space<smem>>, %arg2: memref<1xf32, #tpu.memory_space<smem>>, %arg3: memref<1xf32, #tpu.memory_space<smem>>, %arg4: memref<3x128xf32, #tpu.memory_space<vmem>>, %arg5: memref<1x128xf32, #tpu.memory_space<vmem>>, %arg6: memref<2x128xf32, #tpu.memory_space<vmem>>, %arg7: memref<1x128xf32, #tpu.memory_space<vmem>>) attributes {dimension_semantics = [#tpu.dimension_semantics<parallel>], iteration_bounds = array<i64: 1>, scalar_prefetch = 0 : i64, scratch_operands = 0 : i64, tpu.core_type = #tpu.core_type<tc>, window_params = [{transform_indices = @transform_0, window_bounds = array<i64: 1, 3>}, {transform_indices = @transform_1, window_bounds = array<i64: 1>}, {transform_indices = @transform_2, window_bounds = array<i64: 1>}, {transform_indices = @transform_3, window_bounds = array<i64: 3, 128>}, {transform_indices = @transform_4, window_bounds = array<i64: 1, 128>}, {transform_indices = @transform_5, window_bounds = array<i64: 2, 128>}, {transform_indices = @transform_6, window_bounds = array<i64: 1, 128>}]} {
    %c0 = arith.constant 0 : index
    %c0_0 = arith.constant 0 : index
    %0 = vector.load %arg6[%c0, %c0_0] : memref<2x128xf32, #tpu.memory_space<vmem>>, vector<1x128xf32>
    %c1 = arith.constant 1 : index
    %c0_1 = arith.constant 0 : index
    %1 = vector.load %arg6[%c1, %c0_1] : memref<2x128xf32, #tpu.memory_space<vmem>>, vector<1x128xf32>
    %2 = arith.addf %0, %1 : vector<1x128xf32>
    %c0_2 = arith.constant 0 : index
    %c0_3 = arith.constant 0 : index
    %3 = vector.load %arg5[%c0_2, %c0_3] : memref<1x128xf32, #tpu.memory_space<vmem>>, vector<1x128xf32>
    %4 = arith.mulf %3, %2 : vector<1x128xf32>
    %c0_4 = arith.constant 0 : index
    %c0_5 = arith.constant 0 : index
    %5 = vector.load %arg4[%c0_4, %c0_5] : memref<3x128xf32, #tpu.memory_space<vmem>>, vector<1x128xf32>
    %c0_6 = arith.constant 0 : index
    %c0_7 = arith.constant 0 : index
    %6 = memref.load %arg1[%c0_6, %c0_7] : memref<1x3xf32, #tpu.memory_space<smem>>
    %7 = vector.broadcast %6 : f32 to vector<1x128xf32>
    %8 = arith.mulf %5, %7 : vector<1x128xf32>
    %c1_8 = arith.constant 1 : index
    %c0_9 = arith.constant 0 : index
    %9 = vector.load %arg4[%c1_8, %c0_9] : memref<3x128xf32, #tpu.memory_space<vmem>>, vector<1x128xf32>
    %c0_10 = arith.constant 0 : index
    %c1_11 = arith.constant 1 : index
    %10 = memref.load %arg1[%c0_10, %c1_11] : memref<1x3xf32, #tpu.memory_space<smem>>
    %11 = vector.broadcast %10 : f32 to vector<1x128xf32>
    %12 = arith.mulf %9, %11 : vector<1x128xf32>
    %13 = arith.addf %8, %12 : vector<1x128xf32>
    %c2 = arith.constant 2 : index
    %c0_12 = arith.constant 0 : index
    %14 = vector.load %arg4[%c2, %c0_12] : memref<3x128xf32, #tpu.memory_space<vmem>>, vector<1x128xf32>
    %c0_13 = arith.constant 0 : index
    %c2_14 = arith.constant 2 : index
    %15 = memref.load %arg1[%c0_13, %c2_14] : memref<1x3xf32, #tpu.memory_space<smem>>
    %16 = vector.broadcast %15 : f32 to vector<1x128xf32>
    %17 = arith.mulf %14, %16 : vector<1x128xf32>
    %18 = arith.addf %13, %17 : vector<1x128xf32>
    %c0_15 = arith.constant 0 : index
    %19 = memref.load %arg2[%c0_15] : memref<1xf32, #tpu.memory_space<smem>>
    %20 = vector.broadcast %19 : f32 to vector<1x128xf32>
    %21 = arith.addf %18, %20 : vector<1x128xf32>
    %22 = arith.negf %21 : vector<1x128xf32>
    %23 = math.exp %22 : vector<1x128xf32>
    %cst = arith.constant 1.000000e+00 : f32
    %24 = vector.broadcast %cst : f32 to vector<1x128xf32>
    %25 = arith.addf %24, %23 : vector<1x128xf32>
    %26 = arith.divf %24, %25 : vector<1x128xf32>
    %c0_16 = arith.constant 0 : index
    %27 = memref.load %arg3[%c0_16] : memref<1xf32, #tpu.memory_space<smem>>
    %28 = vector.broadcast %27 : f32 to vector<1x128xf32>
    %29 = arith.subf %26, %28 : vector<1x128xf32>
    %30 = arith.addf %29, %4 : vector<1x128xf32>
    %c0_17 = arith.constant 0 : index
    %c0_18 = arith.constant 0 : index
    %31 = vector.load %arg7[%c0_17, %c0_18] : memref<1x128xf32, #tpu.memory_space<vmem>>, vector<1x128xf32>
    tpu.vector_store %arg7[%c0_17, %c0_18], %30 {strides = array<i32>} : memref<1x128xf32, #tpu.memory_space<vmem>>, vector<1x128xf32>,
    return
  }
  func.func @transform_0(%arg0: i32) -> (i32, i32) {
    %c0_i32 = arith.constant 0 : i32
    %c0_i32_0 = arith.constant 0 : i32
    %c0_i32_1 = arith.constant 0 : i32
    return %c0_i32, %c0_i32_0 : i32, i32
  }
  func.func @transform_1(%arg0: i32) -> i32 {
    %c0_i32 = arith.constant 0 : i32
    %c0_i32_0 = arith.constant 0 : i32
    return %c0_i32 : i32
  }
  func.func @transform_2(%arg0: i32) -> i32 {
    %c0_i32 = arith.constant 0 : i32
    %c0_i32_0 = arith.constant 0 : i32
    return %c0_i32 : i32
  }
  func.func @transform_3(%arg0: i32) -> (i32, i32) {
    %c0_i32 = arith.constant 0 : i32
    %c0_i32_0 = arith.constant 0 : i32
    return %c0_i32, %arg0 : i32, i32
  }
  func.func @transform_4(%arg0: i32) -> (i32, i32) {
    %c0_i32 = arith.constant 0 : i32
    %c0_i32_0 = arith.constant 0 : i32
    return %c0_i32, %arg0 : i32, i32
  }
  func.func @transform_5(%arg0: i32) -> (i32, i32) {
    %c0_i32 = arith.constant 0 : i32
    %c0_i32_0 = arith.constant 0 : i32
    return %c0_i32, %arg0 : i32, i32
  }
  func.func @transform_6(%arg0: i32) -> (i32, i32) {
    %c0_i32 = arith.constant 0 : i32
    %c0_i32_0 = arith.constant 0 : i32
    return %c0_i32, %arg0 : i32, i32
  }
}

</mosaic_0001>

<bundles_post_ra>
// kernel: tpu_custom_call.1
= control target key start
LH: loop header
LB: loop body
LE: loop exit
PB: predicated region body
PF: predicated region fallthrough
CT: control target
= control target key end

     0   :  { %13 = vsyncpa [#allocation6], 0  ;;  %s210_s0 = inlined_call_operand.vmem [shape: f32[1,3], index: 0, kind: input, shape index: {}]   ;;  %s211_s1 = inlined_call_operand.<no memory space> [shape: f32[1], index: 1, kind: input, shape index: {}]   ;;  %s212_s2 = inlined_call_operand.<no memory space> [shape: f32[1], index: 2, kind: input, shape index: {}]   ;;  %s213_s3 = inlined_call_operand.vmem [shape: f32[3,8], index: 3, kind: input, shape index: {}]   ;;  %s214_s4 = inlined_call_operand.vmem [shape: f32[1,8], index: 4, kind: input, shape index: {}]   ;;  %s215_s5 = inlined_call_operand.vmem [shape: f32[2,8], index: 5, kind: input, shape index: {}]   ;;  %s216_s6 = inlined_call_operand.hbm [shape: f32[1,8], index: 6, kind: output, shape index: {}]  }
   0x1   :  { %14 = vsyncpa [#allocation5], 0  ;;  %s21_s23 = sshll.u32 %s210_s0, 4  ;;  %s22_s23 = int_to_ptr.vmem [resolvable:$true] %s21_s23 }
   0x2   :  { %s96_s24 = scalar_lea.vmem %s22_s23, 16  ;;  %p101_p1 = scmp.lt.s32.totalorder %s22_s23, %s22_s23 }
   0x3   :  { %p97_p0 = scmp.ne.s32.totalorder %s22_s23, %s96_s24  ;;  %p102_p2 = scmp.lt.s32.totalorder %s96_s24, %s96_s24 }
   0x5   :  { %p103_p3 = por %p102_p2, %p101_p1 }
   0x7   :  { %p104_p4 = pnand %p103_p3, %p97_p0 }
   0x9   :  { %107 = shalt.err (!%p104_p4)
}
   0xa   :  { %s134_s25 = smov [#allocation4]  }
   0xb   :  { %24 = dma.vmem_to_smem %s22_s23, 16, %s134_s25, [#allocation6]  }
   0xc   :  { %130 = dma.done.wait [#allocation6], 16  }
   0xd   :  { %131 = vsyncadd [#allocation6], 4294967280 }
   0xe   :  { %38 = sfence }
   0xf   :  { %s45_s26 = sld [smem:[#allocation4]]  ;;  %s87_s27 = sld [smem:[#allocation4 + $0x1]]  ;;  %v44_v0 = vld [vmem:[%s213_s3] sm:$0x1]  ;;  %v48_v1 = vld [vmem:[%s213_s3 + $0x1] sm:$0x1]  ;;  %v59_v10 = vstv %s211_s1  ;;  %v68_v20 = vstv %s212_s2 }
  0x10   :  { %s88_s28 = sld [smem:[#allocation4 + $0x2]]  ;;  %v53_v2 = vld [vmem:[%s213_s3 + $0x2] sm:$0x1]  ;;  %v39_v16 = vld [vmem:[%s215_s5] sm:$0x1]  ;;  %s135_s18 = smov [#allocation7]  }
  0x11   :  { %v40_v17 = vld [vmem:[%s215_s5 + $0x1] sm:$0x1]  ;;  %v42_v19 = vld [vmem:[%s214_s4] sm:$0x1]  ;;  %s78_s19 = sshll.u32 %s135_s18, 4  ;;  %s79_s19 = int_to_ptr.vmem [resolvable:$true] %s78_s19 }
  0x12   :  { %v41_v18 = vadd.f32 %v40_v17, %v39_v16  ;;  %s108_s20 = scalar_lea.vmem %s79_s19, 16  ;;  %s112_s5 = scalar_lea.vmem %s79_s19, 32 }
  0x13   :  { %p109_p5 = scmp.ne.s32.totalorder %s79_s19, %s108_s20  ;;  %p113_p6 = scmp.lt.s32.totalorder %s79_s19, %s79_s19 }
  0x14   :  { %v43_v21 = vmul.f32 %v42_v19, %v41_v18  ;;  %p114_p7 = scmp.lt.s32.totalorder %s112_s5, %s108_s20 }
  0x15   :  { %v46_v3 = vstv %s45_s26  ;;  %v50_v5 = vstv %s87_s27 }
  0x16   :  { %v47_v4 = vmul.f32 %v46_v3, %v44_v0  ;;  %v55_v6 = vstv %s88_s28  ;;  %v51_v7 = vmul.f32 %v50_v5, %v48_v1  ;;  %p115_p8 = por %p114_p7, %p113_p6 }
  0x17   :  { %v56_v8 = vmul.f32 %v55_v6, %v53_v2 }
  0x18   :  { %v52_v9 = vadd.f32 %v51_v7, %v47_v4  ;;  %p116_p9 = pnand %p115_p8, %p109_p5 }
  0x1a   :  { %v57_v11 = vadd.f32 %v56_v8, %v52_v9 }
  0x1c   :  { %v60_v12 = vadd.f32 %v59_v10, %v57_v11 }
  0x1e   :  { %v89_v13 = vmul.f32 -1.442695, %v60_v12 }
  0x20   :  { %92 = vpow2.f32 %v89_v13 }
  0x2a   :  { %v93_v14 = vpop.eup %92 }
  0x2b   :  { %v64_v15 = vadd.f32 1.0, %v93_v14 }
  0x2d   :  { %94 = vrcp.f32 %v64_v15 }
  0x37   :  { %v95_v22 = vpop.eup %94 }
  0x38   :  { %v69_v23 = vsub.f32 %v95_v22, %v68_v20 }
  0x3a   :  { %v70_v24 = vadd.f32 %v69_v23, %v43_v21 }
  0x3c   :  { %71 = vst [vmem:[#allocation7] sm:$0x1] %v70_v24 }
  0x3d   :  { %119 = shalt.err (!%p116_p9)
}
  0x3e   :  { %s120_s2 = scalar_lea.hbm %s216_s6, 16 }
  0x3f   :  { %p121_p10 = scmp.ne.s32.totalorder %s216_s6, %s120_s2  ;;  %p124_p11 = scmp.lt.u32.totalorder %s120_s2, %s216_s6 }
  0x41   :  { %p126_p12 = pnand %p124_p11, %p121_p10 }
  0x43   :  { %129 = shalt.err (!%p126_p12)
}
  0x44   :  { %81 = dma.vmem_to_hbm [thread:$0]  %s79_s19, 16, %s216_s6, [#allocation5]  }
  0x45   :  { %132 = dma.done.wait [#allocation5], 16  }
  0x46   :  { %133 = vsyncadd [#allocation5], 4294967280 }
  0x47   :  { %85 = vsyncpa [#allocation5], 1 }
  0x48   :  { %86 = vsyncpa [#allocation6], 1 }

</bundles_post_ra>
